<compile_context>
chip_gen: v7x
topology: tpu7x:2x2x1
jax: 0.10.0
libtpu: 0.0.40
codegen_flags: <defaults>
</compile_context>

<pallas_src>
import math
from functools import partial

import jax
import jax.numpy as jnp
from jax.experimental import pallas as pl
from jax.experimental.pallas import tpu as pltpu


# ---------------------------------------------------------------------------
# Glue: im2col (torch.nn.functional.unfold equivalent, same feature ordering
# (kernel_h, kernel_w, channel) as the module's pre_process permute/reshape).
# ---------------------------------------------------------------------------
def im2col_nchw(x, kernel_size, stride, padding, dilation):
    b, c, h, w = x.shape
    kh, kw = kernel_size
    sh, sw = stride
    ph, pw = padding
    dh, dw = dilation
    h_out = (h + 2 * ph - dh * (kh - 1) - 1) // sh + 1
    w_out = (w + 2 * pw - dw * (kw - 1) - 1) // sw + 1
    xp = jnp.pad(x, ((0, 0), (0, 0), (ph, ph), (pw, pw)))
    i_idx = (jnp.arange(h_out) * sh)[:, None] + (jnp.arange(kh) * dh)[None, :]   # (h_out, kh)
    j_idx = (jnp.arange(w_out) * sw)[:, None] + (jnp.arange(kw) * dw)[None, :]   # (w_out, kw)
    # advanced indexing -> (b, c, h_out, kh, w_out, kw)
    patches = xp[:, :, i_idx[:, :, None, None], j_idx[None, None, :, :]]
    # -> (b, h_out, w_out, kh, kw, c) -> (b*h_out*w_out, kh*kw*c)
    patches = patches.transpose(0, 2, 4, 3, 5, 1)
    rows = patches.reshape(b * h_out * w_out, kh * kw * c)
    return rows, h_out, w_out


# ---------------------------------------------------------------------------
# Glue: materialize each deformable-butterfly factor as its equivalent dense
# block-diagonal (in_size, out_size) matrix, then collapse the whole chain
# into a single W_total.  O(#params) work, done once outside the hot path.
# ---------------------------------------------------------------------------
def build_factor_matrices(twiddle, R_shapes):
    Ws = []
    off = 0
    for R in R_shapes:
        out_size, in_size, row, col, diag = R
        nb = in_size // (col * diag)
        num_p = col * out_size
        # flat params laid out as (nb, diag, row, col) -> permute to (nb,row,col,diag)
        t = twiddle[off:off + num_p].reshape(nb, diag, row, col).transpose(0, 2, 3, 1)
        off += num_p
        eye_d = jnp.eye(diag, dtype=t.dtype)
        # blk[b, c*diag+d, r*diag+d'] = t[b,r,c,d] * delta(d,d')
        blk = jnp.einsum('brcd,de->bcdre', t, eye_d).reshape(nb, col * diag, row * diag)
        eye_b = jnp.eye(nb, dtype=t.dtype)
        # W[b, i, k, o] = blk[b,i,o] * delta(b,k)  ->  (in_size, out_size)
        W = jnp.einsum('bio,bk->biko', blk, eye_b).reshape(nb * col * diag, nb * row * diag)
        Ws.append(W)
    return Ws


def build_collapsed_weight(twiddle, R_shapes):
    Ws = build_factor_matrices(twiddle, R_shapes)
    W = Ws[0]
    for Wi in Ws[1:]:
        W = jnp.dot(W, Wi, preferred_element_type=jnp.float32)
    return W  # (in_size, out_size)


# ---------------------------------------------------------------------------
# Pallas kernel: one MXU matmul + bias per row tile (lane-dense output).
# ---------------------------------------------------------------------------
def _debut_kernel(x_ref, w_ref, b_ref, o_ref):
    acc = jnp.dot(x_ref[...], w_ref[...], preferred_element_type=jnp.float32)
    o_ref[...] = (acc + b_ref[...]).astype(o_ref.dtype)


def _choose_tile_rows(n_rows, in_size, out_pad, itemsize,
                      max_tile=1024, min_grid_steps=4,
                      vmem_budget=32 << 20):
    """Largest row tile (multiple of 8) whose double-buffered footprint fits
    the VMEM budget, while keeping >= min_grid_steps so the parallel grid
    axis can still be sharded across v7x's two TensorCores."""
    # Bytes per row of (input tile + f32 output tile), double-buffered.
    per_row = 2 * (in_size * itemsize + out_pad * 4)
    resident = 2 * (in_size * out_pad * itemsize + out_pad * 4)  # weight + bias
    fit = max(8, (vmem_budget - resident) // max(per_row, 1))
    tile = min(max_tile, fit, max(8, -(-n_rows // min_grid_steps)))
    tile = max(8, (tile // 8) * 8)
    return tile


def debut_rows_pallas(rows, w_total, bias, *, max_tile_rows=1024,
                      compute_dtype=jnp.float32):
    """rows: (N, in_size) -> (N, out_size) = rows @ W_total + bias."""
    n_rows, in_size = rows.shape
    out_size = w_total.shape[1]

    # Lane-dense output: pad only the small weight/bias columns to 128, never
    # the hot row matrix.  Padded lanes are exact zeros and sliced off below.
    lane = 128
    out_pad = -(-out_size // lane) * lane
    w_p = jnp.pad(w_total, ((0, 0), (0, out_pad - out_size)))
    b_p = jnp.pad(bias, (0, out_pad - out_size)).reshape(1, out_pad)

    if compute_dtype != jnp.float32:
        # bf16 MXU inputs (v6e/v7x); accumulation stays f32 via
        # preferred_element_type in the kernel.
        rows = rows.astype(compute_dtype)
        w_p = w_p.astype(compute_dtype)

    itemsize = jnp.dtype(compute_dtype).itemsize
    tile_rows = _choose_tile_rows(n_rows, in_size, out_pad, itemsize,
                                  max_tile=max_tile_rows)
    grid = (pl.cdiv(n_rows, tile_rows),)   # ragged last block handled by Pallas;
                                           # no HBM-level jnp.pad of the rows.

    cost = pl.CostEstimate(
        flops=2 * n_rows * in_size * out_pad,
        transcendentals=0,
        bytes_accessed=(n_rows * in_size * itemsize          # rows read
                        + n_rows * out_pad * 4               # output write
                        + in_size * out_pad * itemsize       # weight
                        + out_pad * 4),                      # bias
    )

    # VMEM budget: double-buffered row tile + output tile, plus the (tiny,
    # constant-index) weight/bias buffers; clamp inside v7x's 64 MiB physical.
    vmem_bytes = (2 * tile_rows * (in_size * itemsize + out_pad * 4)
                  + 2 * (in_size * out_pad * itemsize + out_pad * 4)
                  + (4 << 20))
    vmem_bytes = int(min(max(vmem_bytes, 16 << 20), 48 << 20))

    out = pl.pallas_call(
        _debut_kernel,
        out_shape=jax.ShapeDtypeStruct((n_rows, out_pad), jnp.float32),
        grid_spec=pltpu.PrefetchScalarGridSpec(
            num_scalar_prefetch=0,
            grid=grid,
            in_specs=[
                pl.BlockSpec((tile_rows, in_size), lambda i: (i, 0)),
                # constant-index weight/bias: revisited block, tiny VMEM cost
                pl.BlockSpec((in_size, out_pad), lambda i: (0, 0)),
                pl.BlockSpec((1, out_pad), lambda i: (0, 0)),
            ],
            out_specs=pl.BlockSpec((tile_rows, out_pad), lambda i: (i, 0)),
        ),
        compiler_params=pltpu.CompilerParams(
            dimension_semantics=("parallel",),
            vmem_limit_bytes=vmem_bytes),
        cost_estimate=cost,
    )(rows, w_p, b_p)

    return out[:, :out_size]


# ---------------------------------------------------------------------------
# Full forward: pre_process -> collapsed butterfly matmul (Pallas) -> post
# ---------------------------------------------------------------------------
@partial(jax.jit, static_argnames=("R_shapes", "kernel_size", "stride",
                                   "padding", "dilation", "output_channel",
                                   "compute_dtype"))
def debut_2dconv_forward(x, twiddle, bias, R_shapes, kernel_size, stride,
                         padding, dilation, output_channel,
                         compute_dtype=jnp.float32):
    batch = x.shape[0]
    rows, h_out, w_out = im2col_nchw(x, kernel_size, stride, padding, dilation)
    w_total = build_collapsed_weight(twiddle, R_shapes)
    out_rows = debut_rows_pallas(rows, w_total, bias,
                                 compute_dtype=compute_dtype)
    out = out_rows.reshape(batch, h_out * w_out, output_channel)
    out = out.transpose(0, 2, 1).reshape(batch, output_channel, h_out, w_out)
    return out


# ---------------------------------------------------------------------------
# Pure-JAX reference (mirrors deform_butterfly_mult_torch exactly)
# ---------------------------------------------------------------------------
def debut_reference(x, twiddle, bias, R_shapes, kernel_size, stride, padding,
                    dilation, output_channel):
    batch = x.shape[0]
    rows, h_out, w_out = im2col_nchw(x, kernel_size, stride, padding, dilation)
    out = rows
    off = 0
    bs = rows.shape[0]
    for R in R_shapes:
        out_size, in_size, row, col, diag = R
        nb = in_size // (col * diag)
        num_p = col * out_size
        t = twiddle[off:off + num_p].reshape(nb, diag, row, col).transpose(0, 2, 3, 1)
        xr = out.reshape(bs, nb, 1, col, diag)
        out = (t[None] * xr).sum(axis=3).reshape(bs, -1)
        off += num_p
    out = out.reshape(bs, R_shapes[-1][0]) + bias
    out = out.reshape(batch, h_out * w_out, output_channel)
    return out.transpose(0, 2, 1).reshape(batch, output_channel, h_out, w_out)


if __name__ == "__main__":
    # Small deterministic config consistent with the module:
    #   input (2, 4, 16, 16), 3x3 conv, stride 1, pad 1 -> in_size = 4*3*3 = 36
    #   butterfly chain 36 -> 24 -> 8, output_channel = 8
    batch, cin, H, W = 2, 4, 16, 16
    cout = 8
    ksize, stride, padding, dilation = 3, 1, 1, 1
    # R_shape = [output_size, input_size, row, col, diag]
    R_shapes = ((24, 36, 4, 6, 3), (8, 24, 2, 6, 2))

    key = jax.random.PRNGKey(0)
    kx, kt, kb = jax.random.split(key, 3)

    x = jax.random.normal(kx, (batch, cin, H, W), dtype=jnp.float32)

    num_parameters = sum(R[0] * R[3] for R in R_shapes)           # sum(out_size*col)
    twiddle = jax.random.normal(kt, (num_parameters,), dtype=jnp.float32) * (1.0 / math.sqrt(2))
    in_size = cin * ksize * ksize
    bound = 1.0 / math.sqrt(in_size)
    bias = jax.random.uniform(kb, (cout,), dtype=jnp.float32, minval=-bound, maxval=bound)

    out = debut_2dconv_forward(
        x, twiddle, bias, R_shapes,
        (ksize, ksize), (stride, stride), (padding, padding), (dilation, dilation), cout)
    out = jax.block_until_ready(out)

    ref = debut_reference(
        x, twiddle, bias, R_shapes,
        (ksize, ksize), (stride, stride), (padding, padding), (dilation, dilation), cout)

    assert out.shape == (batch, cout, H, W), out.shape
    assert jnp.allclose(out, ref, rtol=1e-4, atol=1e-4), float(jnp.max(jnp.abs(out - ref)))

    print("KERNEL_OK")
</pallas_src>

<mosaic_0001>
module attributes {stable_mosaic.version = 11 : i64} {
  func.func @_debut_kernel(%arg0: i32, %arg1: memref<128x36xf32, #tpu.memory_space<vmem>>, %arg2: memref<36x128xf32, #tpu.memory_space<vmem>>, %arg3: memref<1x128xf32, #tpu.memory_space<vmem>>, %arg4: memref<128x128xf32, #tpu.memory_space<vmem>>) attributes {dimension_semantics = [#tpu.dimension_semantics<parallel>], iteration_bounds = array<i64: 4>, scalar_prefetch = 0 : i64, scratch_operands = 0 : i64, tpu.core_type = #tpu.core_type<tc>, window_params = [{transform_indices = @transform_0, window_bounds = array<i64: 128, 36>}, {pipeline_mode = #tpu.pipeline_mode<synchronous>, transform_indices = @transform_1, window_bounds = array<i64: 36, 128>}, {pipeline_mode = #tpu.pipeline_mode<synchronous>, transform_indices = @transform_2, window_bounds = array<i64: 1, 128>}, {transform_indices = @transform_3, window_bounds = array<i64: 128, 128>}]} {
    %c0 = arith.constant 0 : index
    %c0_0 = arith.constant 0 : index
    %0 = vector.load %arg1[%c0, %c0_0] : memref<128x36xf32, #tpu.memory_space<vmem>>, vector<128x36xf32>
    %c0_1 = arith.constant 0 : index
    %c0_2 = arith.constant 0 : index
    %1 = vector.load %arg2[%c0_1, %c0_2] : memref<36x128xf32, #tpu.memory_space<vmem>>, vector<36x128xf32>
    %cst = arith.constant dense<0.000000e+00> : vector<128x128xf32>
    %2 = tpu.matmul %0, %1, %cst {dimension_numbers = #tpu.dot_dimension_numbers<[1], [0], [0], [1], [0, 0, 1, 1], [], []>} : vector<128x36xf32>, vector<36x128xf32>, vector<128x128xf32> -> vector<128x128xf32>
    %c0_3 = arith.constant 0 : index
    %c0_4 = arith.constant 0 : index
    %3 = vector.load %arg3[%c0_3, %c0_4] : memref<1x128xf32, #tpu.memory_space<vmem>>, vector<1x128xf32>
    %4 = vector.broadcast %3 : vector<1x128xf32> to vector<128x128xf32>
    %5 = arith.addf %2, %4 : vector<128x128xf32>
    %c0_5 = arith.constant 0 : index
    %c0_6 = arith.constant 0 : index
    %6 = vector.load %arg4[%c0_5, %c0_6] : memref<128x128xf32, #tpu.memory_space<vmem>>, vector<128x128xf32>
    tpu.vector_store %arg4[%c0_5, %c0_6], %5 {strides = array<i32>} : memref<128x128xf32, #tpu.memory_space<vmem>>, vector<128x128xf32>,
    return
  }
  func.func @transform_0(%arg0: i32) -> (i32, i32) {
    %c0_i32 = arith.constant 0 : i32
    %c0_i32_0 = arith.constant 0 : i32
    return %arg0, %c0_i32 : i32, i32
  }
  func.func @transform_1(%arg0: i32) -> (i32, i32) {
    %c0_i32 = arith.constant 0 : i32
    %c0_i32_0 = arith.constant 0 : i32
    %c0_i32_1 = arith.constant 0 : i32
    return %c0_i32, %c0_i32_0 : i32, i32
  }
  func.func @transform_2(%arg0: i32) -> (i32, i32) {
    %c0_i32 = arith.constant 0 : i32
    %c0_i32_0 = arith.constant 0 : i32
    %c0_i32_1 = arith.constant 0 : i32
    return %c0_i32, %c0_i32_0 : i32, i32
  }
  func.func @transform_3(%arg0: i32) -> (i32, i32) {
    %c0_i32 = arith.constant 0 : i32
    %c0_i32_0 = arith.constant 0 : i32
    return %arg0, %c0_i32 : i32, i32
  }
}

</mosaic_0001>

<bundles_post_ra>
// kernel: debut_2dconv_forward.1
= control target key start
LH: loop header
LB: loop body
LE: loop exit
PB: predicated region body
PF: predicated region fallthrough
CT: control target
= control target key end

     0   :  { %s606_s12 = smov 0   ;;  %s704_s0 = inlined_call_operand.vmem [shape: f32[512,36], index: 0, kind: input, shape index: {}]   ;;  %s705_s1 = inlined_call_operand.vmem [shape: f32[36,128], index: 1, kind: input, shape index: {}]   ;;  %s706_s2 = inlined_call_operand.vmem [shape: f32[1,128], index: 2, kind: input, shape index: {}]   ;;  %s707_s3 = inlined_call_operand.vmem [shape: f32[512,128], index: 3, kind: output, shape index: {}]  }
   0x1 LB: > { %s472_s13 = sadd.s32 4294967295, %s584_s12   ;;  %p476_p0 = scmp.ge.s32.totalorder %s584_s12, 1  ;;  %s584_s12 = sphi %s606_s12, %s13_s12  }
   0x2   : > { %p138_p1 = scmp.lt.s32.totalorder %s584_s12, 5 }
   0x4   : > { %p139_p2 = pnand %p476_p0, %p138_p1 }
   0x5   : > { %v190_v0 = vld [vmem:[%s705_s1] sm:$0xff] (!%p139_p2)  ;;  %v191_v1 = vld [vmem:[%s705_s1 + $0x8] sm:$0xff] (!%p139_p2)  ;;  %v192_v2 = vld [vmem:[%s705_s1 + $0x10] sm:$0xff] (!%p139_p2)  ;;  %s477_s20 = sshll.u32 (!%p139_p2), %s472_s13, 4  ;;  %vm251_vm0 = vcmask (!%p139_p2), 1043456   ;;  %vm202_vm1 = vcmask (!%p139_p2), 293888  }
   0x6   : > { %142 = sbr.rel (%p139_p2) target bundleno = 247 (0xf7), region = 32  ;;  %v556_v3 = vpack.c.bf16 (!%p139_p2), %v191_v1, %v190_v0  ;;  %v193_v4 = vld [vmem:[%s705_s1 + $0x18] sm:$0xff] (!%p139_p2)  ;;  %p163_p3 = scmp.lt.s32.totalorder (!%p139_p2), %s477_s20, 63  ;;  %v194_v6 = vld [vmem:[%s705_s1 + $0x20] sm:$0xf] (!%p139_p2) }
   0x7   : > { %v560_v5 = vpack.c.bf16 (!%p139_p2), %v193_v4, %v192_v2  ;;  %v481_v23 = vld [vmem:[%s706_s2] ss:$0 sm:$0xff] (!%p139_p2) }
   0x8   : > { %557 = vmatprep.subr.bf16.mxu0 (!%p139_p2), %v556_v3  ;;  %564 = vmatprep.subr.bf16.mxu1 (!%p139_p2), %v556_v3 }
   0x9   : > { %559 = vmatpush3.bf16.msra.mxu0 (!%p139_p2), %v556_v3  ;;  %567 = vmatpush3.bf16.msra.mxu1 (!%p139_p2), %v556_v3 }
   0xa   : > { %561 = vmatprep.subr.bf16.mxu0 (!%p139_p2), %v560_v5  ;;  %565 = vmatprep.subr.bf16.mxu1 (!%p139_p2), %v560_v5 }
   0xd   : > { %s709_s20 = smov (!%p163_p3, %s477_s20), 63  ;;  %563 = vmatpush3.bf16.msra.mxu0 %v560_v5  ;;  %568 = vmatpush3.bf16.msra.mxu1 %v560_v5 }
   0xe   : > { %s478_s23 = sshll.u32 %s709_s20, 3  ;;  %530 = vmatprep.subr.msk.mxu0 %vm251_vm0, %v194_v6  ;;  %566 = vmatprep.subr.msk.mxu1 %vm251_vm0, %v194_v6 }
   0xf   : > { %s637_s28 = scalar_lea.vmem %s704_s0, %s478_s23  ;;  %s683_s6 = scalar_lea.vmem %s707_s3, %s478_s23 }
  0x10   : > { %v174_v7 = vld [vmem:[%s637_s28] sm:$0xff]  ;;  %v175_v9 = vld [vmem:[%s637_s28 + $0x8] sm:$0xff]  ;;  %v176_v11 = vld [vmem:[%s637_s28 + $0x10] sm:$0xff] }
  0x11   : > { %v182_v8 = vld [vmem:[%s637_s28 + $0x40] sm:$0xff]  ;;  %532 = vmatprep.mubr.msk.f32.mxu0 %vm202_vm1, %v174_v7  ;;  %v183_v10 = vld [vmem:[%s637_s28 + $0x48] sm:$0xff]  ;;  %v184_v12 = vld [vmem:[%s637_s28 + $0x50] sm:$0xff]  ;;  %531 = vmatpush3.msk.msra.mxu0 %vm251_vm0, %v194_v6 }
  0x12   : > { %544 = vmatprep.mubr.msk.f32.mxu1 %vm202_vm1, %v182_v8  ;;  %569 = vmatpush3.msk.msra.mxu1 %vm251_vm0, %v194_v6  ;;  %v177_v13 = vld [vmem:[%s637_s28 + $0x18] sm:$0xff]  ;;  %v178_v15 = vld [vmem:[%s637_s28 + $0x20] sm:$0xff]  ;;  %v179_v17 = vld [vmem:[%s637_s28 + $0x28] sm:$0xff] }
  0x13   : > { %533 = vmatmul.mubr.msk.f32.vlgmr.msra.gmra.mrb[0].mxu0 %vm202_vm1, %v175_v9  ;;  %545 = vmatmul.mubr.msk.f32.vlgmr.msra.gmra.mrb[0].mxu1 %vm202_vm1, %v183_v10  ;;  %v185_v14 = vld [vmem:[%s637_s28 + $0x58] sm:$0xff]  ;;  %v186_v16 = vld [vmem:[%s637_s28 + $0x60] sm:$0xff]  ;;  %v187_v18 = vld [vmem:[%s637_s28 + $0x68] sm:$0xff] }
  0x14   : > { %535 = vmatprep.mubr.msk.f32.mxu0 %vm202_vm1, %v176_v11  ;;  %547 = vmatprep.mubr.msk.f32.mxu1 %vm202_vm1, %v184_v12  ;;  %v180_v19 = vld [vmem:[%s637_s28 + $0x30] sm:$0xff]  ;;  %v181_v21 = vld [vmem:[%s637_s28 + $0x38] sm:$0xff] }
  0x15   : > { %v188_v20 = vld [vmem:[%s637_s28 + $0x70] sm:$0xff]  ;;  %v189_v22 = vld [vmem:[%s637_s28 + $0x78] sm:$0xff] }
  0x17   : > { %536 = vmatmul.mubr.msk.f32.gmra.mrb[2].mxu0 %vm202_vm1, %v177_v13  ;;  %548 = vmatmul.mubr.msk.f32.gmra.mrb[2].mxu1 %vm202_vm1, %v185_v14 }
  0x18   : > { %538 = vmatprep.mubr.msk.f32.mxu0 %vm202_vm1, %v178_v15  ;;  %550 = vmatprep.mubr.msk.f32.mxu1 %vm202_vm1, %v186_v16 }
  0x1b   : > { %539 = vmatmul.mubr.msk.f32.gmra.mrb[4].mxu0 %vm202_vm1, %v179_v17  ;;  %551 = vmatmul.mubr.msk.f32.gmra.mrb[4].mxu1 %vm202_vm1, %v187_v18 }
  0x1c   : > { %541 = vmatprep.mubr.msk.f32.mxu0 %vm202_vm1, %v180_v19  ;;  %553 = vmatprep.mubr.msk.f32.mxu1 %vm202_vm1, %v188_v20 }
  0x1f   : > { %542 = vmatmul.mubr.msk.f32.gmra.mrb[6].mxu0 %vm202_vm1, %v181_v21  ;;  %554 = vmatmul.mubr.msk.f32.gmra.mrb[6].mxu1 %vm202_vm1, %v189_v22 }
  0xe6   : > { %v534_v24 = vpop.f32.mrb[0].mxu0  ;;  %v546_v25 = vpop.f32.mrb[0].mxu1 }
  0xe7   : > { %v327_v26 = vadd.f32 %v534_v24, %v481_v23  ;;  %v367_v27 = vadd.f32 %v546_v25, %v481_v23  ;;  %v321_v28 = vpop.f32.mrb[1].mxu0  ;;  %v361_v29 = vpop.f32.mrb[1].mxu1 }
  0xe8   : > { %v322_v30 = vadd.f32 %v481_v23, %v321_v28  ;;  %v362_v31 = vadd.f32 %v481_v23, %v361_v29 }
  0xe9   : > { %401 = vst [vmem:[%s683_s6 + $0x8] sm:$0xff] %v327_v26  ;;  %409 = vst [vmem:[%s683_s6 + $0x48] sm:$0xff] %v367_v27 }
  0xea   : > { %400 = vst [vmem:[%s683_s6] sm:$0xff] %v322_v30  ;;  %408 = vst [vmem:[%s683_s6 + $0x40] sm:$0xff] %v362_v31  ;;  %v537_v32 = vpop.f32.mrb[2].mxu0  ;;  %v549_v33 = vpop.f32.mrb[2].mxu1 }
  0xeb   : > { %v337_v34 = vadd.f32 %v537_v32, %v481_v23  ;;  %v377_v35 = vadd.f32 %v549_v33, %v481_v23  ;;  %v331_v36 = vpop.f32.mrb[3].mxu0  ;;  %v371_v37 = vpop.f32.mrb[3].mxu1 }
  0xec   : > { %v332_v38 = vadd.f32 %v481_v23, %v331_v36  ;;  %v372_v39 = vadd.f32 %v481_v23, %v371_v37 }
  0xed   : > { %403 = vst [vmem:[%s683_s6 + $0x18] sm:$0xff] %v337_v34  ;;  %411 = vst [vmem:[%s683_s6 + $0x58] sm:$0xff] %v377_v35 }
  0xee   : > { %402 = vst [vmem:[%s683_s6 + $0x10] sm:$0xff] %v332_v38  ;;  %410 = vst [vmem:[%s683_s6 + $0x50] sm:$0xff] %v372_v39  ;;  %v540_v40 = vpop.f32.mrb[4].mxu0  ;;  %v552_v41 = vpop.f32.mrb[4].mxu1 }
  0xef   : > { %v347_v42 = vadd.f32 %v540_v40, %v481_v23  ;;  %v387_v43 = vadd.f32 %v552_v41, %v481_v23  ;;  %v341_v44 = vpop.f32.mrb[5].mxu0  ;;  %v381_v45 = vpop.f32.mrb[5].mxu1 }
  0xf0   : > { %v342_v46 = vadd.f32 %v481_v23, %v341_v44  ;;  %v382_v47 = vadd.f32 %v481_v23, %v381_v45 }
  0xf1   : > { %405 = vst [vmem:[%s683_s6 + $0x28] sm:$0xff] %v347_v42  ;;  %413 = vst [vmem:[%s683_s6 + $0x68] sm:$0xff] %v387_v43 }
  0xf2   : > { %404 = vst [vmem:[%s683_s6 + $0x20] sm:$0xff] %v342_v46  ;;  %412 = vst [vmem:[%s683_s6 + $0x60] sm:$0xff] %v382_v47  ;;  %v543_v48 = vpop.f32.mrb[6].mxu0  ;;  %v555_v49 = vpop.f32.mrb[6].mxu1 }
  0xf3   : > { %v357_v50 = vadd.f32 %v543_v48, %v481_v23  ;;  %v397_v51 = vadd.f32 %v555_v49, %v481_v23  ;;  %v351_v52 = vpop.f32.mrb[7].mxu0  ;;  %v391_v53 = vpop.f32.mrb[7].mxu1 }
  0xf4   : > { %v352_v54 = vadd.f32 %v481_v23, %v351_v52  ;;  %v392_v55 = vadd.f32 %v481_v23, %v391_v53 }
  0xf5   : > { %407 = vst [vmem:[%s683_s6 + $0x38] sm:$0xff] %v357_v50  ;;  %415 = vst [vmem:[%s683_s6 + $0x78] sm:$0xff] %v397_v51 }
  0xf6   : > { %406 = vst [vmem:[%s683_s6 + $0x30] sm:$0xff] %v352_v54  ;;  %414 = vst [vmem:[%s683_s6 + $0x70] sm:$0xff] %v392_v55 }
  0xf7 PF: > { %s13_s12 = sadd.s32 1, %s584_s12  }
  0xf8   : > { %p10_p4 = scmp.ge.s32.totalorder %s13_s12, 6  }
  0xfa   :  { %12 = sbr.rel (!%p10_p4) target bundleno = 1 (0x1), region = 62 }

</bundles_post_ra>
